<compile_context>
chip_gen: v7x
topology: tpu7x:2x2x1
jax: 0.10.0
libtpu: 0.0.40
codegen_flags: <defaults>
</compile_context>

<pallas_src>
import jax
import jax.numpy as jnp
from jax.experimental import pallas as pl
from jax.experimental.pallas import tpu as pltpu


def _round_up(x, m):
    return ((x + m - 1) // m) * m


def _se_kernel(x_ref, w1_ref, w2_ref, o_ref):
    # x_ref: (TM, C), w1_ref: (C, Ip), w2_ref: (Ip, C), o_ref: (TM, C)
    x = x_ref[...]
    xm = x.astype(w1_ref.dtype)                       # bf16 operands for the MXU
    # fc[0]: Linear(channel, inner, bias=False)  +  fc[1]: ReLU   (f32 accumulation)
    h = jnp.maximum(
        jnp.dot(xm, w1_ref[...], preferred_element_type=jnp.float32), 0.0
    )
    # fc[2]: Linear(inner, channel, bias=False)  +  fc[3]: Sigmoid, then (1 - sigmoid).
    logits = jnp.dot(
        h.astype(w2_ref.dtype), w2_ref[...], preferred_element_type=jnp.float32
    )
    # 1 - sigmoid(z) == sigmoid(-z) == 1 / (1 + exp(z)); exp + rcp run on the EUP slot.
    gate = pl.reciprocal(1.0 + jnp.exp(logits), approx=True).astype(x.dtype)
    o_ref[...] = x * gate


def _vmem_budgets():
    """(row-tile VMEM budget, vmem_limit cap) chosen per TPU generation."""
    cap = 64 * (1 << 20)                               # conservative (v7x) fallback
    try:
        cap = int(pltpu.get_tpu_info().vmem_capacity_bytes)
    except Exception:
        pass
    if cap >= 128 * (1 << 20):                         # v5e / v6e (128 MiB VMEM)
        return 48 * (1 << 20), 100 * (1 << 20)
    return 22 * (1 << 20), 52 * (1 << 20)              # v7x (64 MiB physical, headroom)


def _pick_tm(m_rows, channel, i_pad, act_bytes, mat_bytes, budget_bytes):
    """Row-tile size: as large as the VMEM budget (minus resident weights) allows,
    multiple of 8, capped at 2048 rows and at >= ~4 grid tiles."""
    # Resident weights: assume worst-case double-buffered when budgeting.
    budget = max(budget_bytes - 4 * channel * i_pad * mat_bytes, 4 * (1 << 20))
    # Per row: x + out tiles (double-buffered, act dtype) + bf16 copy + f32 intermediates.
    per_row = 4 * channel * act_bytes + 2 * channel + 8 * i_pad + 8 * channel
    tm = budget // max(per_row, 1)
    tm = max(8, min(2048, (tm // 8) * 8))
    tm = min(tm, _round_up(m_rows, 8))
    # Keep at least ~4 row tiles so both v7x TensorCores get work and the pipeline overlaps.
    tm = min(tm, _round_up(pl.cdiv(m_rows, 4), 8))
    return int(max(tm, 8))


def _se_call(x2, w1p, w2p, tm, vmem_limit, single_buffer_weights):
    M, channel = x2.shape
    i_pad = w1p.shape[1]
    grid = (pl.cdiv(M, tm),)

    w_kwargs = {}
    if single_buffer_weights and hasattr(pl, "Buffered"):
        w_kwargs["pipeline_mode"] = pl.Buffered(1)     # weights fetched once, single buffer

    act_bytes = jnp.dtype(x2.dtype).itemsize
    mat_bytes = jnp.dtype(w1p.dtype).itemsize
    cost = pl.CostEstimate(
        flops=4 * M * channel * i_pad + 4 * M * channel,
        transcendentals=M * channel,
        bytes_accessed=2 * M * channel * act_bytes + 2 * channel * i_pad * mat_bytes,
    )

    return pl.pallas_call(
        _se_kernel,
        out_shape=jax.ShapeDtypeStruct((M, channel), x2.dtype),
        grid=grid,
        in_specs=[
            pl.BlockSpec((tm, channel), lambda i: (i, 0)),                 # x rows (pipelined)
            pl.BlockSpec((channel, i_pad), lambda i: (0, 0), **w_kwargs),  # w1 (resident)
            pl.BlockSpec((i_pad, channel), lambda i: (0, 0), **w_kwargs),  # w2 (resident)
        ],
        out_specs=pl.BlockSpec((tm, channel), lambda i: (i, 0)),
        compiler_params=pltpu.CompilerParams(
            dimension_semantics=("parallel",),          # shard row tiles across TCs on v7x
            vmem_limit_bytes=vmem_limit,
        ),
        cost_estimate=cost,
    )(x2, w1p, w2p)


def se_layer(x, w1_t, w2_t, *, use_bf16_matmul=True):
    """SELayer forward.

    x:    (b, c, channel)
    w1_t: (channel, inner)   -- transpose of torch Linear(channel, inner).weight
    w2_t: (inner, channel)   -- transpose of torch Linear(inner, channel).weight
    returns: (b, c, channel)  with out = x * (1 - sigmoid(relu(x @ w1_t) @ w2_t))
    """
    b, c, d = x.shape
    channel, inner = w1_t.shape
    assert d == channel and w2_t.shape == (inner, channel)

    M = b * c
    x2 = x.reshape(M, channel)                          # metadata-only reshape, no HBM copy

    # Pad only the tiny weights (inner dim -> multiple of 128); padded rows/cols are inert.
    mat_dtype = jnp.bfloat16 if use_bf16_matmul else w1_t.dtype
    Ip = _round_up(inner, 128)
    if Ip != inner:
        w1p = jnp.zeros((channel, Ip), mat_dtype).at[:, :inner].set(w1_t.astype(mat_dtype))
        w2p = jnp.zeros((Ip, channel), mat_dtype).at[:inner, :].set(w2_t.astype(mat_dtype))
    else:
        w1p = w1_t.astype(mat_dtype)
        w2p = w2_t.astype(mat_dtype)

    act_bytes = jnp.dtype(x.dtype).itemsize
    mat_bytes = jnp.dtype(mat_dtype).itemsize
    tile_budget, limit_cap = _vmem_budgets()
    tm = _pick_tm(M, channel, Ip, act_bytes, mat_bytes, tile_budget)

    # VMEM footprint estimate (double-buffered x/out tiles, weights, intermediates).
    vmem_est = (4 * tm * channel * act_bytes
                + 4 * channel * Ip * mat_bytes
                + tm * (2 * channel + 8 * Ip + 8 * channel))
    vmem_limit = int(min(limit_cap, max(32 * (1 << 20), 2 * vmem_est)))

    try:
        out2 = _se_call(x2, w1p, w2p, tm, vmem_limit, single_buffer_weights=True)
    except Exception:
        # Fallback if this jax/Mosaic version rejects single-buffered (Buffered(1)) specs.
        out2 = _se_call(x2, w1p, w2p, tm, vmem_limit, single_buffer_weights=False)

    return out2.reshape(b, c, d)


def se_layer_ref(x, w1_t, w2_t):
    """Pure-JAX reference (mirrors the PyTorch forward, f32 matmuls)."""
    h = jnp.maximum(x @ w1_t, 0.0)
    y = jax.nn.sigmoid(h @ w2_t)
    return x * (1.0 - y)


if __name__ == "__main__":
    # Small shapes consistent with the module: x is (b, c, d) with d == channel.
    b, c, channel, inner = 2, 4, 16, 8

    key = jax.random.PRNGKey(0)
    kx, k1, k2 = jax.random.split(key, 3)

    x = jax.random.normal(kx, (b, c, channel), dtype=jnp.float32)
    # Deterministic synthetic weights; torch Linear(channel, inner).weight is
    # (inner, channel) -- we store its transpose.
    w1_t = (jax.random.normal(k1, (channel, inner), dtype=jnp.float32)
            * (1.0 / jnp.sqrt(channel)))
    w2_t = (jax.random.normal(k2, (inner, channel), dtype=jnp.float32)
            * (1.0 / jnp.sqrt(inner)))

    out = jax.block_until_ready(se_layer(x, w1_t, w2_t))

    ref = se_layer_ref(x, w1_t, w2_t)
    assert out.shape == (b, c, channel)
    # bf16 MXU operands (f32 accumulation) + approx reciprocal -> slightly loosened tolerance.
    assert jnp.allclose(out, ref, atol=5e-2, rtol=5e-2), "mismatch vs reference"

    print("KERNEL_OK")
</pallas_src>

<mosaic_0001>
module attributes {stable_mosaic.version = 11 : i64} {
  func.func @_se_kernel(%arg0: i32, %arg1: memref<8x16xf32, #tpu.memory_space<vmem>>, %arg2: memref<16x128xbf16, #tpu.memory_space<vmem>>, %arg3: memref<128x16xbf16, #tpu.memory_space<vmem>>, %arg4: memref<8x16xf32, #tpu.memory_space<vmem>>) attributes {dimension_semantics = [#tpu.dimension_semantics<parallel>], iteration_bounds = array<i64: 1>, scalar_prefetch = 0 : i64, scratch_operands = 0 : i64, tpu.core_type = #tpu.core_type<tc>, window_params = [{transform_indices = @transform_0, window_bounds = array<i64: 8, 16>}, {pipeline_mode = #tpu.pipeline_mode<synchronous>, transform_indices = @transform_1, window_bounds = array<i64: 16, 128>}, {pipeline_mode = #tpu.pipeline_mode<synchronous>, transform_indices = @transform_2, window_bounds = array<i64: 128, 16>}, {transform_indices = @transform_3, window_bounds = array<i64: 8, 16>}]} {
    %c0 = arith.constant 0 : index
    %c0_0 = arith.constant 0 : index
    %0 = vector.load %arg1[%c0, %c0_0] : memref<8x16xf32, #tpu.memory_space<vmem>>, vector<8x16xf32>
    %1 = arith.truncf %0 : vector<8x16xf32> to vector<8x16xbf16>
    %c0_1 = arith.constant 0 : index
    %c0_2 = arith.constant 0 : index
    %2 = vector.load %arg2[%c0_1, %c0_2] : memref<16x128xbf16, #tpu.memory_space<vmem>>, vector<16x128xbf16>
    %cst = arith.constant dense<0.000000e+00> : vector<8x128xf32>
    %3 = tpu.matmul %1, %2, %cst {dimension_numbers = #tpu.dot_dimension_numbers<[1], [0], [0], [1], [0, 0, 1, 1], [], []>} : vector<8x16xbf16>, vector<16x128xbf16>, vector<8x128xf32> -> vector<8x128xf32>
    %cst_3 = arith.constant 0.000000e+00 : f32
    %4 = vector.broadcast %cst_3 : f32 to vector<8x128xf32>
    %5 = arith.maximumf %3, %4 : vector<8x128xf32>
    %6 = arith.truncf %5 : vector<8x128xf32> to vector<8x128xbf16>
    %c0_4 = arith.constant 0 : index
    %c0_5 = arith.constant 0 : index
    %7 = vector.load %arg3[%c0_4, %c0_5] : memref<128x16xbf16, #tpu.memory_space<vmem>>, vector<128x16xbf16>
    %cst_6 = arith.constant dense<0.000000e+00> : vector<8x16xf32>
    %8 = tpu.matmul %6, %7, %cst_6 {dimension_numbers = #tpu.dot_dimension_numbers<[1], [0], [0], [1], [0, 0, 1, 1], [], []>} : vector<8x128xbf16>, vector<128x16xbf16>, vector<8x16xf32> -> vector<8x16xf32>
    %9 = math.exp %8 : vector<8x16xf32>
    %cst_7 = arith.constant 1.000000e+00 : f32
    %10 = vector.broadcast %cst_7 : f32 to vector<8x16xf32>
    %11 = arith.addf %10, %9 : vector<8x16xf32>
    %12 = tpu.reciprocal %11 {approx = true} : vector<8x16xf32> -> vector<8x16xf32>
    %13 = arith.mulf %0, %12 : vector<8x16xf32>
    %c0_8 = arith.constant 0 : index
    %c0_9 = arith.constant 0 : index
    %14 = vector.load %arg4[%c0_8, %c0_9] : memref<8x16xf32, #tpu.memory_space<vmem>>, vector<8x16xf32>
    tpu.vector_store %arg4[%c0_8, %c0_9], %13 {strides = array<i32>} : memref<8x16xf32, #tpu.memory_space<vmem>>, vector<8x16xf32>,
    return
  }
  func.func @transform_0(%arg0: i32) -> (i32, i32) {
    %c0_i32 = arith.constant 0 : i32
    %c0_i32_0 = arith.constant 0 : i32
    return %arg0, %c0_i32 : i32, i32
  }
  func.func @transform_1(%arg0: i32) -> (i32, i32) {
    %c0_i32 = arith.constant 0 : i32
    %c0_i32_0 = arith.constant 0 : i32
    %c0_i32_1 = arith.constant 0 : i32
    return %c0_i32, %c0_i32_0 : i32, i32
  }
  func.func @transform_2(%arg0: i32) -> (i32, i32) {
    %c0_i32 = arith.constant 0 : i32
    %c0_i32_0 = arith.constant 0 : i32
    %c0_i32_1 = arith.constant 0 : i32
    return %c0_i32, %c0_i32_0 : i32, i32
  }
  func.func @transform_3(%arg0: i32) -> (i32, i32) {
    %c0_i32 = arith.constant 0 : i32
    %c0_i32_0 = arith.constant 0 : i32
    return %arg0, %c0_i32 : i32, i32
  }
}

module attributes {stable_mosaic.version = 11 : i64} {
  func.func @_se_kernel(%arg0: i32, %arg1: memref<8x16xf32, #tpu.memory_space<vmem>>, %arg2: memref<16x128xbf16, #tpu.memory_space<vmem>>, %arg3: memref<128x16xbf16, #tpu.memory_space<vmem>>, %arg4: memref<8x16xf32, #tpu.memory_space<vmem>>) attributes {dimension_semantics = [#tpu.dimension_semantics<parallel>], iteration_bounds = array<i64: 1>, scalar_prefetch = 0 : i64, scratch_operands = 0 : i64, tpu.core_type = #tpu.core_type<tc>, window_params = [{transform_indices = @transform_0, window_bounds = array<i64: 8, 16>}, {pipeline_mode = #tpu.pipeline_mode<synchronous>, transform_indices = @transform_1, window_bounds = array<i64: 16, 128>}, {pipeline_mode = #tpu.pipeline_mode<synchronous>, transform_indices = @transform_2, window_bounds = array<i64: 128, 16>}, {transform_indices = @transform_3, window_bounds = array<i64: 8, 16>}]} {
    %c0 = arith.constant 0 : index
    %c0_0 = arith.constant 0 : index
    %0 = vector.load %arg1[%c0, %c0_0] : memref<8x16xf32, #tpu.memory_space<vmem>>, vector<8x16xf32>
    %1 = arith.truncf %0 : vector<8x16xf32> to vector<8x16xbf16>
    %c0_1 = arith.constant 0 : index
    %c0_2 = arith.constant 0 : index
    %2 = vector.load %arg2[%c0_1, %c0_2] : memref<16x128xbf16, #tpu.memory_space<vmem>>, vector<16x128xbf16>
    %cst = arith.constant dense<0.000000e+00> : vector<8x128xf32>
    %3 = tpu.matmul %1, %2, %cst {dimension_numbers = #tpu.dot_dimension_numbers<[1], [0], [0], [1], [0, 0, 1, 1], [], []>} : vector<8x16xbf16>, vector<16x128xbf16>, vector<8x128xf32> -> vector<8x128xf32>
    %cst_3 = arith.constant 0.000000e+00 : f32
    %4 = vector.broadcast %cst_3 : f32 to vector<8x128xf32>
    %5 = arith.maximumf %3, %4 : vector<8x128xf32>
    %6 = arith.truncf %5 : vector<8x128xf32> to vector<8x128xbf16>
    %c0_4 = arith.constant 0 : index
    %c0_5 = arith.constant 0 : index
    %7 = vector.load %arg3[%c0_4, %c0_5] : memref<128x16xbf16, #tpu.memory_space<vmem>>, vector<128x16xbf16>
    %cst_6 = arith.constant dense<0.000000e+00> : vector<8x16xf32>
    %8 = tpu.matmul %6, %7, %cst_6 {dimension_numbers = #tpu.dot_dimension_numbers<[1], [0], [0], [1], [0, 0, 1, 1], [], []>} : vector<8x128xbf16>, vector<128x16xbf16>, vector<8x16xf32> -> vector<8x16xf32>
    %9 = math.exp %8 : vector<8x16xf32>
    %cst_7 = arith.constant 1.000000e+00 : f32
    %10 = vector.broadcast %cst_7 : f32 to vector<8x16xf32>
    %11 = arith.addf %10, %9 : vector<8x16xf32>
    %12 = tpu.reciprocal %11 {approx = true} : vector<8x16xf32> -> vector<8x16xf32>
    %13 = arith.mulf %0, %12 : vector<8x16xf32>
    %c0_8 = arith.constant 0 : index
    %c0_9 = arith.constant 0 : index
    %14 = vector.load %arg4[%c0_8, %c0_9] : memref<8x16xf32, #tpu.memory_space<vmem>>, vector<8x16xf32>
    tpu.vector_store %arg4[%c0_8, %c0_9], %13 {strides = array<i32>} : memref<8x16xf32, #tpu.memory_space<vmem>>, vector<8x16xf32>,
    return
  }
  func.func @transform_0(%arg0: i32) -> (i32, i32) {
    %c0_i32 = arith.constant 0 : i32
    %c0_i32_0 = arith.constant 0 : i32
    return %arg0, %c0_i32 : i32, i32
  }
  func.func @transform_1(%arg0: i32) -> (i32, i32) {
    %c0_i32 = arith.constant 0 : i32
    %c0_i32_0 = arith.constant 0 : i32
    %c0_i32_1 = arith.constant 0 : i32
    return %c0_i32, %c0_i32_0 : i32, i32
  }
  func.func @transform_2(%arg0: i32) -> (i32, i32) {
    %c0_i32 = arith.constant 0 : i32
    %c0_i32_0 = arith.constant 0 : i32
    %c0_i32_1 = arith.constant 0 : i32
    return %c0_i32, %c0_i32_0 : i32, i32
  }
  func.func @transform_3(%arg0: i32) -> (i32, i32) {
    %c0_i32 = arith.constant 0 : i32
    %c0_i32_0 = arith.constant 0 : i32
    return %arg0, %c0_i32 : i32, i32
  }
}

</mosaic_0001>

<bundles_post_ra>
// kernel: tpu_custom_call.1
= control target key start
LH: loop header
LB: loop body
LE: loop exit
PB: predicated region body
PF: predicated region fallthrough
CT: control target
= control target key end

     0   :  { %v283_v1 = vmov 0.0   ;;  %vm26_vm0 = vcmask 130048   ;;  %vm284_vm1 = vmmov 0   ;;  %s350_s0 = inlined_call_operand.vmem [shape: f32[8,16], index: 0, kind: input, shape index: {}]   ;;  %s351_s1 = inlined_call_operand.vmem [shape: bf16[16,128], index: 1, kind: input, shape index: {}]   ;;  %s352_s2 = inlined_call_operand.vmem [shape: bf16[128,16], index: 2, kind: input, shape index: {}]   ;;  %s353_s3 = inlined_call_operand.hbm [shape: f32[8,16], index: 3, kind: output, shape index: {}]  }
   0x1   :  { %v246_v0 = vld [vmem:[%s351_s1] sm:$0xff]   ;;  %217 = vmatprep.subr.bf16.mxu0 %v283_v1  ;;  %223 = vmatprep.subr.bf16.mxu1 %v283_v1  ;;  %v248_v5 = vld [vmem:[%s352_s2 + $0x8] sm:$0xff]   ;;  %v249_v6 = vld [vmem:[%s352_s2 + $0x10] sm:$0xff]  }
   0x2   :  { %v16_v2 = vld [vmem:[%s350_s0] sm:$0xff]  ;;  %218 = vmatpush3.bf16.msra.mxu0 %v246_v0  ;;  %219 = vmatprep.mubr.msk.bf16.mxu0 %vm284_vm1, %v283_v1 }
   0x3   :  { %v247_v3 = vld [vmem:[%s352_s2] sm:$0xff]   ;;  %v17_v4 = vpack.c.bf16 %v16_v2, %v16_v2  ;;  %239 = vmatprep.mubr.msk.bf16.mxu1 %vm284_vm1, %v283_v1 }
   0x4   :  { %224 = vmatpush3.bf16.msra.mxu1 %v247_v3 }
   0x5   :  { %225 = vmatprep.subr.bf16.mxu1 %v283_v1  ;;  %220 = vmatmul.mubr.msk.bf16.vlgmr.msra.gmra.mrb[0].mxu0 %vm26_vm0, %v17_v4 }
   0x8   :  { %226 = vmatpush3.bf16.msra.mxu1 %v248_v5 }
   0x9   :  { %227 = vmatprep.subr.bf16.mxu1 %v283_v1 }
   0xa   :  { %8 = vsyncpa [#allocation3], 0  ;;  %v250_v7 = vld [vmem:[%s352_s2 + $0x18] sm:$0xff]   ;;  %v251_v8 = vld [vmem:[%s352_s2 + $0x20] sm:$0xff]   ;;  %s285_s30 = smov [#allocation2]  }
   0xb   :  { %v252_v9 = vld [vmem:[%s352_s2 + $0x28] sm:$0xff]   ;;  %v253_v10 = vld [vmem:[%s352_s2 + $0x30] sm:$0xff]   ;;  %v254_v11 = vld [vmem:[%s352_s2 + $0x38] sm:$0xff]   ;;  %s188_s4 = sshll.u32 %s285_s30, 4  ;;  %s189_s4 = int_to_ptr.vmem [resolvable:$true] %s188_s4 }
   0xc   :  { %228 = vmatpush3.bf16.msra.mxu1 %v249_v6  ;;  %s259_s2 = scalar_lea.vmem %s189_s4, 128  ;;  %p264_p1 = scmp.lt.s32.totalorder %s189_s4, %s189_s4 }
   0xd   :  { %229 = vmatprep.subr.bf16.mxu1 %v283_v1  ;;  %p260_p0 = scmp.ne.s32.totalorder %s189_s4, %s259_s2  ;;  %p265_p2 = scmp.lt.s32.totalorder %s259_s2, %s259_s2 }
   0xf   :  { %p266_p3 = por %p265_p2, %p264_p1 }
  0x10   :  { %230 = vmatpush3.bf16.msra.mxu1 %v250_v7 }
  0x11   :  { %231 = vmatprep.subr.bf16.mxu1 %v283_v1  ;;  %p267_p4 = pnand %p266_p3, %p260_p0 }
  0x14   :  { %232 = vmatpush3.bf16.msra.mxu1 %v251_v8 }
  0x15   :  { %233 = vmatprep.subr.bf16.mxu1 %v283_v1 }
  0x18   :  { %234 = vmatpush3.bf16.msra.mxu1 %v252_v9 }
  0x19   :  { %235 = vmatprep.subr.bf16.mxu1 %v283_v1 }
  0x1c   :  { %236 = vmatpush3.bf16.msra.mxu1 %v253_v10 }
  0x1d   :  { %237 = vmatprep.subr.bf16.mxu1 %v283_v1 }
  0x20   :  { %238 = vmatpush3.bf16.msra.mxu1 %v254_v11 }
  0xd8   :  { %v64_v12 = vpop.f32.mrb[0].mxu0 }
  0xd9   :  { %v70_v13 = vmax.f32 %v64_v12, 0.0  ;;  %v221_v14 = vpop.f32.mrb[1].mxu0 }
  0xda   :  { %v67_v15 = vpop.f32.mrb[2].mxu0 }
  0xdb   :  { %v71_v16 = vpack.c.bf16 %v70_v13, %v70_v13  ;;  %v222_v17 = vpop.f32.mrb[3].mxu0 }
  0xdd   :  { %240 = vmatmul.mubr.bf16.vlgmr.msra.gmra.mrb[0].mxu1 %v71_v16 }
 0x1b0   :  { %v170_v18 = vpop.f32.mrb[0].mxu1 }
 0x1b1   :  { %v176_v19 = vmul.f32 1.442695, %v170_v18  ;;  %v241_v20 = vpop.f32.mrb[1].mxu1 }
 0x1b2   :  { %v173_v21 = vpop.f32.mrb[2].mxu1 }
 0x1b3   :  { %255 = vpow2.f32 %v176_v19  ;;  %v242_v22 = vpop.f32.mrb[3].mxu1 }
 0x1bd   :  { %v256_v23 = vpop.eup %255 }
 0x1be   :  { %v178_v24 = vadd.f32 1.0, %v256_v23 }
 0x1c0   :  { %257 = vrcp.f32 %v178_v24 }
 0x1ca   :  { %v258_v25 = vpop.eup %257 }
 0x1cb   :  { %v180_v26 = vmul.f32 %v258_v25, %v16_v2 }
 0x1cd   :  { %181 = vst.msk [vmem:[#allocation2] sm:$0xff] %vm26_vm0, %v180_v26 }
 0x1ce   :  { %270 = shalt.err (!%p267_p4)
}
 0x1cf   :  { %s271_s7 = scalar_lea.hbm %s353_s3, 128 }
 0x1d0   :  { %p272_p5 = scmp.ne.s32.totalorder %s353_s3, %s271_s7  ;;  %p275_p6 = scmp.lt.u32.totalorder %s271_s7, %s353_s3 }
 0x1d2   :  { %p277_p7 = pnand %p275_p6, %p272_p5 }
 0x1d4   :  { %280 = shalt.err (!%p277_p7)
}
 0x1d5   :  { %191 = dma.vmem_to_hbm [thread:$0]  %s189_s4, 128, %s353_s3, [#allocation3]  }
 0x1d6   :  { %281 = dma.done.wait [#allocation3], 128  }
 0x1d7   :  { %282 = vsyncadd [#allocation3], 4294967168 }
 0x1d8   :  { %195 = vsyncpa [#allocation3], 1 }

// kernel: tpu_custom_call.1
= control target key start
LH: loop header
LB: loop body
LE: loop exit
PB: predicated region body
PF: predicated region fallthrough
CT: control target
= control target key end

     0   :  { %v283_v1 = vmov 0.0   ;;  %vm26_vm0 = vcmask 130048   ;;  %vm284_vm1 = vmmov 0   ;;  %s350_s0 = inlined_call_operand.vmem [shape: f32[8,16], index: 0, kind: input, shape index: {}]   ;;  %s351_s1 = inlined_call_operand.vmem [shape: bf16[16,128], index: 1, kind: input, shape index: {}]   ;;  %s352_s2 = inlined_call_operand.vmem [shape: bf16[128,16], index: 2, kind: input, shape index: {}]   ;;  %s353_s3 = inlined_call_operand.hbm [shape: f32[8,16], index: 3, kind: output, shape index: {}]  }
   0x1   :  { %v246_v0 = vld [vmem:[%s351_s1] sm:$0xff]   ;;  %217 = vmatprep.subr.bf16.mxu0 %v283_v1  ;;  %223 = vmatprep.subr.bf16.mxu1 %v283_v1  ;;  %v248_v5 = vld [vmem:[%s352_s2 + $0x8] sm:$0xff]   ;;  %v249_v6 = vld [vmem:[%s352_s2 + $0x10] sm:$0xff]  }
   0x2   :  { %v16_v2 = vld [vmem:[%s350_s0] sm:$0xff]  ;;  %218 = vmatpush3.bf16.msra.mxu0 %v246_v0  ;;  %219 = vmatprep.mubr.msk.bf16.mxu0 %vm284_vm1, %v283_v1 }
   0x3   :  { %v247_v3 = vld [vmem:[%s352_s2] sm:$0xff]   ;;  %v17_v4 = vpack.c.bf16 %v16_v2, %v16_v2  ;;  %239 = vmatprep.mubr.msk.bf16.mxu1 %vm284_vm1, %v283_v1 }
   0x4   :  { %224 = vmatpush3.bf16.msra.mxu1 %v247_v3 }
   0x5   :  { %225 = vmatprep.subr.bf16.mxu1 %v283_v1  ;;  %220 = vmatmul.mubr.msk.bf16.vlgmr.msra.gmra.mrb[0].mxu0 %vm26_vm0, %v17_v4 }
   0x8   :  { %226 = vmatpush3.bf16.msra.mxu1 %v248_v5 }
   0x9   :  { %227 = vmatprep.subr.bf16.mxu1 %v283_v1 }
   0xa   :  { %8 = vsyncpa [#allocation3], 0  ;;  %v250_v7 = vld [vmem:[%s352_s2 + $0x18] sm:$0xff]   ;;  %v251_v8 = vld [vmem:[%s352_s2 + $0x20] sm:$0xff]   ;;  %s285_s30 = smov [#allocation2]  }
   0xb   :  { %v252_v9 = vld [vmem:[%s352_s2 + $0x28] sm:$0xff]   ;;  %v253_v10 = vld [vmem:[%s352_s2 + $0x30] sm:$0xff]   ;;  %v254_v11 = vld [vmem:[%s352_s2 + $0x38] sm:$0xff]   ;;  %s188_s4 = sshll.u32 %s285_s30, 4  ;;  %s189_s4 = int_to_ptr.vmem [resolvable:$true] %s188_s4 }
   0xc   :  { %228 = vmatpush3.bf16.msra.mxu1 %v249_v6  ;;  %s259_s2 = scalar_lea.vmem %s189_s4, 128  ;;  %p264_p1 = scmp.lt.s32.totalorder %s189_s4, %s189_s4 }
   0xd   :  { %229 = vmatprep.subr.bf16.mxu1 %v283_v1  ;;  %p260_p0 = scmp.ne.s32.totalorder %s189_s4, %s259_s2  ;;  %p265_p2 = scmp.lt.s32.totalorder %s259_s2, %s259_s2 }
   0xf   :  { %p266_p3 = por %p265_p2, %p264_p1 }
  0x10   :  { %230 = vmatpush3.bf16.msra.mxu1 %v250_v7 }
  0x11   :  { %231 = vmatprep.subr.bf16.mxu1 %v283_v1  ;;  %p267_p4 = pnand %p266_p3, %p260_p0 }
  0x14   :  { %232 = vmatpush3.bf16.msra.mxu1 %v251_v8 }
  0x15   :  { %233 = vmatprep.subr.bf16.mxu1 %v283_v1 }
  0x18   :  { %234 = vmatpush3.bf16.msra.mxu1 %v252_v9 }
  0x19   :  { %235 = vmatprep.subr.bf16.mxu1 %v283_v1 }
  0x1c   :  { %236 = vmatpush3.bf16.msra.mxu1 %v253_v10 }
  0x1d   :  { %237 = vmatprep.subr.bf16.mxu1 %v283_v1 }
  0x20   :  { %238 = vmatpush3.bf16.msra.mxu1 %v254_v11 }
  0xd8   :  { %v64_v12 = vpop.f32.mrb[0].mxu0 }
  0xd9   :  { %v70_v13 = vmax.f32 %v64_v12, 0.0  ;;  %v221_v14 = vpop.f32.mrb[1].mxu0 }
  0xda   :  { %v67_v15 = vpop.f32.mrb[2].mxu0 }
  0xdb   :  { %v71_v16 = vpack.c.bf16 %v70_v13, %v70_v13  ;;  %v222_v17 = vpop.f32.mrb[3].mxu0 }
  0xdd   :  { %240 = vmatmul.mubr.bf16.vlgmr.msra.gmra.mrb[0].mxu1 %v71_v16 }
 0x1b0   :  { %v170_v18 = vpop.f32.mrb[0].mxu1 }
 0x1b1   :  { %v176_v19 = vmul.f32 1.442695, %v170_v18  ;;  %v241_v20 = vpop.f32.mrb[1].mxu1 }
 0x1b2   :  { %v173_v21 = vpop.f32.mrb[2].mxu1 }
 0x1b3   :  { %255 = vpow2.f32 %v176_v19  ;;  %v242_v22 = vpop.f32.mrb[3].mxu1 }
 0x1bd   :  { %v256_v23 = vpop.eup %255 }
 0x1be   :  { %v178_v24 = vadd.f32 1.0, %v256_v23 }
 0x1c0   :  { %257 = vrcp.f32 %v178_v24 }
 0x1ca   :  { %v258_v25 = vpop.eup %257 }
 0x1cb   :  { %v180_v26 = vmul.f32 %v258_v25, %v16_v2 }
 0x1cd   :  { %181 = vst.msk [vmem:[#allocation2] sm:$0xff] %vm26_vm0, %v180_v26 }
 0x1ce   :  { %270 = shalt.err (!%p267_p4)
}
 0x1cf   :  { %s271_s7 = scalar_lea.hbm %s353_s3, 128 }
 0x1d0   :  { %p272_p5 = scmp.ne.s32.totalorder %s353_s3, %s271_s7  ;;  %p275_p6 = scmp.lt.u32.totalorder %s271_s7, %s353_s3 }
 0x1d2   :  { %p277_p7 = pnand %p275_p6, %p272_p5 }
 0x1d4   :  { %280 = shalt.err (!%p277_p7)
}
 0x1d5   :  { %191 = dma.vmem_to_hbm [thread:$0]  %s189_s4, 128, %s353_s3, [#allocation3]  }
 0x1d6   :  { %281 = dma.done.wait [#allocation3], 128  }
 0x1d7   :  { %282 = vsyncadd [#allocation3], 4294967168 }
 0x1d8   :  { %195 = vsyncpa [#allocation3], 1 }

</bundles_post_ra>
